<compile_context>
chip_gen: v7x
topology: tpu7x:2x2x1
jax: 0.10.0
libtpu: 0.0.40
codegen_flags: <defaults>
</compile_context>

<pallas_src>
import functools

import jax
import jax.numpy as jnp
from jax.experimental import pallas as pl
from jax.experimental.pallas import tpu as pltpu

# ---- synthetic "args" ------------------------------------------------------
FM_FEATURE_SIZE = 20          # [uid, mid, 18 genre multi-hot columns]
STATE_DIM       = 16          # RL-state prefix of x (without_rl=False branch)
U_EMB, M_EMB, G_EMB = 16, 16, 16
LAYERS          = (32, 16)    # args.layers = "32,16"
INPUT_HIDDEN    = STATE_DIM + U_EMB + M_EMB + G_EMB   # 64
MAX_UID, MAX_MID = 100, 200
CLAMP_MIN, CLAMP_MAX = 0.0, 5.0
BATCH = 8

N_GENRE  = FM_FEATURE_SIZE - 2                        # 18
RAW_FEAT = STATE_DIM + FM_FEATURE_SIZE                # 36 raw input columns
UID_COL  = STATE_DIM                                  # 16
MID_COL  = STATE_DIM + 1                              # 17
U_PAD    = 128                                        # one-hot width (>= MAX_UID+1)
M_PAD    = 256                                        # one-hot width (>= MAX_MID+1)
OUT_PAD  = 8                                          # output lanes; col 0 = prediction

assert MAX_UID + 1 <= U_PAD and MAX_MID + 1 <= M_PAD


def _cdiv(a, b):
    return -(-a // b)


def _round_up(n, m):
    return _cdiv(n, m) * m


def _choose_batch_tile(B, batch_tile):
    """Pick tile from B (cdiv-based) so padding never wastes ~a full tile."""
    n_tiles = max(1, _cdiv(B, batch_tile))
    tb = _round_up(_cdiv(B, n_tiles), 8)
    b_pad = _round_up(B, tb)
    return tb, b_pad


# ---- Pallas kernel: fused embeddings + 3-layer MLP + clamp -----------------
def ncf_kernel(x_ref, wx_ref, u1_ref, m1_ref, b1_ref, w2_ref, b2_ref,
               w3_ref, b3_ref, out_ref):
    f32 = jnp.float32
    x = x_ref[...]                                    # [tb, 36] raw features
    tb = x.shape[0]
    wdt = wx_ref.dtype

    # ---- layer 1 as a sum of partial dots (all foldings done at prepare) ----
    # raw-feature contribution (state + genres; uid/mid rows of Wx are zero)
    h = jnp.dot(x.astype(wdt), wx_ref[...], preferred_element_type=f32)

    # in-kernel embedding "gathers": one-hot matmuls on the idle MXU.
    # (Out-of-range ids simply match nothing -> zero contribution, never OOB.)
    uid = x[:, UID_COL:UID_COL + 1].astype(jnp.int32)          # [tb, 1]
    mid = x[:, MID_COL:MID_COL + 1].astype(jnp.int32)          # [tb, 1]
    u_oh = (uid == jax.lax.broadcasted_iota(jnp.int32, (tb, U_PAD), 1)).astype(wdt)
    m_oh = (mid == jax.lax.broadcasted_iota(jnp.int32, (tb, M_PAD), 1)).astype(wdt)
    h = h + jnp.dot(u_oh, u1_ref[...], preferred_element_type=f32)
    h = h + jnp.dot(m_oh, m1_ref[...], preferred_element_type=f32)
    h = h + b1_ref[...]
    h = jnp.maximum(h, 0.0)                           # ReLU; Dropout == identity at eval

    # ---- layer 2 -------------------------------------------------------------
    h = jnp.dot(h.astype(wdt), w2_ref[...], preferred_element_type=f32) + b2_ref[...]
    h = jnp.maximum(h, 0.0)

    # ---- layer 3 (padded to OUT_PAD lanes; only column 0 is meaningful) ------
    y = jnp.dot(h.astype(wdt), w3_ref[...], preferred_element_type=f32) + b3_ref[...]
    out_ref[...] = jnp.clip(y, CLAMP_MIN, CLAMP_MAX).astype(out_ref.dtype)


# ---- one-time parameter preparation (fold / pad / cast) --------------------
def prepare_params(params, dtype=jnp.float32):
    """Fold g_embedding + embedding tables into layer-1 weights; pad layer 3."""
    s = STATE_DIM
    w1 = params["w1"]
    w1_s = w1[:s]                                    # state rows        [16, 32]
    w1_u = w1[s:s + U_EMB]                           # u-embedding rows  [16, 32]
    w1_m = w1[s + U_EMB:s + U_EMB + M_EMB]           # m-embedding rows  [16, 32]
    w1_g = w1[s + U_EMB + M_EMB:]                    # g-embedding rows  [16, 32]

    # raw-feature weights over the 36 input columns (uid/mid rows stay zero)
    wx = jnp.zeros((RAW_FEAT, LAYERS[0]), jnp.float32)
    wx = wx.at[:s].set(w1_s)
    wx = wx.at[MID_COL + 1:].set(params["wg"] @ w1_g)            # genre columns

    # per-id layer-1 contributions (embedding table folded through W1)
    u1 = jnp.zeros((U_PAD, LAYERS[0]), jnp.float32)
    u1 = u1.at[:MAX_UID + 1].set(params["u_table"] @ w1_u)
    m1 = jnp.zeros((M_PAD, LAYERS[0]), jnp.float32)
    m1 = m1.at[:MAX_MID + 1].set(params["m_table"] @ w1_m)

    b1f = params["b1"] + params["bg"] @ w1_g                     # [1, 32]

    # pad last layer to OUT_PAD lanes (prediction lives in column 0)
    w3p = jnp.zeros((LAYERS[1], OUT_PAD), jnp.float32).at[:, :1].set(params["w3"])
    b3p = jnp.zeros((1, OUT_PAD), jnp.float32).at[:, :1].set(params["b3"])

    cast = lambda a: a.astype(dtype)
    return {
        "wx": cast(wx), "u1": cast(u1), "m1": cast(m1),
        "w2": cast(params["w2"]), "w3": cast(w3p),
        # biases stay f32 — they are added to f32 dot accumulators
        "b1": b1f.astype(jnp.float32),
        "b2": params["b2"].astype(jnp.float32),
        "b3": b3p.astype(jnp.float32),
    }


@functools.partial(jax.jit, static_argnames=("batch_tile",))
def ncf_forward(x, kparams, batch_tile=2048):
    """Fused NCF forward. x: [B, 36] float32 -> [B, 1] float32."""
    B = x.shape[0]
    tb, b_pad = _choose_batch_tile(B, batch_tile)
    # TODO(synk): on v7x at production batch sizes keep b_pad // tb >= 2 so the
    # "parallel" batch axis actually uses both TensorCores.

    x = x.astype(kparams["wx"].dtype)                 # bf16 path: ids < 256 stay exact
    if b_pad != B:
        x = jnp.pad(x, ((0, b_pad - B), (0, 0)))
    grid = (b_pad // tb,)

    const = lambda i: (0, 0)                          # weights/biases stay VMEM-resident
    out = pl.pallas_call(
        ncf_kernel,
        out_shape=jax.ShapeDtypeStruct((b_pad, OUT_PAD), jnp.float32),
        grid=grid,
        in_specs=[
            pl.BlockSpec((tb, RAW_FEAT), lambda i: (i, 0)),     # raw x tiles (pipelined)
            pl.BlockSpec(kparams["wx"].shape, const),           # wx  [36, 32]
            pl.BlockSpec(kparams["u1"].shape, const),           # u1  [128, 32]
            pl.BlockSpec(kparams["m1"].shape, const),           # m1  [256, 32]
            pl.BlockSpec(kparams["b1"].shape, const),           # b1  [1, 32]
            pl.BlockSpec(kparams["w2"].shape, const),           # w2  [32, 16]
            pl.BlockSpec(kparams["b2"].shape, const),           # b2  [1, 16]
            pl.BlockSpec(kparams["w3"].shape, const),           # w3  [16, 8]
            pl.BlockSpec(kparams["b3"].shape, const),           # b3  [1, 8]
        ],
        out_specs=pl.BlockSpec((tb, OUT_PAD), lambda i: (i, 0)),
        compiler_params=pltpu.CompilerParams(
            dimension_semantics=("parallel",)),
        # Working set at tb=2048 is well under v5e's 16 MiB default scoped
        # VMEM, so no vmem_limit_bytes override is needed.
    )(x, kparams["wx"], kparams["u1"], kparams["m1"], kparams["b1"],
      kparams["w2"], kparams["b2"], kparams["w3"], kparams["b3"])

    return out[:B, :1]


# ---- pure-JAX reference (matches the torch forward) ------------------------
def ncf_reference(x, params):
    hi = jax.lax.Precision.HIGHEST
    uids = x[:, -FM_FEATURE_SIZE].astype(jnp.int32)
    mids = x[:, -(FM_FEATURE_SIZE - 1)].astype(jnp.int32)
    genres = x[:, -N_GENRE:]
    state = x[:, :-FM_FEATURE_SIZE]
    uemb = params["u_table"][uids]
    memb = params["m_table"][mids]
    gemb = jnp.dot(genres, params["wg"], precision=hi) + params["bg"]
    h = jnp.concatenate([state, uemb, memb, gemb], axis=1)
    h = jnp.maximum(jnp.dot(h, params["w1"], precision=hi) + params["b1"], 0.0)
    h = jnp.maximum(jnp.dot(h, params["w2"], precision=hi) + params["b2"], 0.0)
    y = jnp.dot(h, params["w3"], precision=hi) + params["b3"]
    return jnp.clip(y, CLAMP_MIN, CLAMP_MAX)


def init_params(key):
    ks = jax.random.split(key, 10)

    def dense(k, fan_in, fan_out):
        scale = 1.0 / jnp.sqrt(jnp.float32(fan_in))
        w = jax.random.uniform(k, (fan_in, fan_out), jnp.float32, -scale, scale)
        b = jnp.zeros((1, fan_out), jnp.float32)
        return w, b

    wg, bg = dense(ks[0], N_GENRE, G_EMB)
    w1, b1 = dense(ks[1], INPUT_HIDDEN, LAYERS[0])
    w2, b2 = dense(ks[2], LAYERS[0], LAYERS[1])
    w3, b3 = dense(ks[3], LAYERS[1], 1)
    return {
        "u_table": jax.random.normal(ks[4], (MAX_UID + 1, U_EMB), jnp.float32),
        "m_table": jax.random.normal(ks[5], (MAX_MID + 1, M_EMB), jnp.float32),
        "wg": wg, "bg": bg, "w1": w1, "b1": b1,
        "w2": w2, "b2": b2, "w3": w3, "b3": b3,
    }


if __name__ == "__main__":
    key = jax.random.PRNGKey(0)
    kp, kx, ku, km, kg = jax.random.split(key, 5)
    params = init_params(kp)
    kparams = prepare_params(params)        # one-time fold/pad (f32 default)

    # build x = [rl_state | uid | mid | genres]
    rl_state = jax.random.normal(kx, (BATCH, STATE_DIM), jnp.float32)
    uid_col = jax.random.randint(ku, (BATCH, 1), 0, MAX_UID + 1).astype(jnp.float32)
    mid_col = jax.random.randint(km, (BATCH, 1), 0, MAX_MID + 1).astype(jnp.float32)
    genre_cols = jax.random.bernoulli(kg, 0.3, (BATCH, N_GENRE)).astype(jnp.float32)
    x = jnp.concatenate([rl_state, uid_col, mid_col, genre_cols], axis=1)

    out = jax.block_until_ready(ncf_forward(x, kparams))
    ref = jax.block_until_ready(ncf_reference(x, params))

    assert out.shape == (BATCH, 1), out.shape
    assert jnp.allclose(out, ref, atol=1e-3, rtol=1e-3), (out, ref)
    print("KERNEL_OK")
</pallas_src>

<mosaic_0001>
module attributes {stable_mosaic.version = 11 : i64} {
  func.func @ncf_kernel(%arg0: i32, %arg1: memref<8x36xf32, #tpu.memory_space<vmem>>, %arg2: memref<36x32xf32, #tpu.memory_space<vmem>>, %arg3: memref<128x32xf32, #tpu.memory_space<vmem>>, %arg4: memref<256x32xf32, #tpu.memory_space<vmem>>, %arg5: memref<1x32xf32, #tpu.memory_space<vmem>>, %arg6: memref<32x16xf32, #tpu.memory_space<vmem>>, %arg7: memref<1x16xf32, #tpu.memory_space<vmem>>, %arg8: memref<16x8xf32, #tpu.memory_space<vmem>>, %arg9: memref<1x8xf32, #tpu.memory_space<vmem>>, %arg10: memref<8x8xf32, #tpu.memory_space<vmem>>) attributes {dimension_semantics = [#tpu.dimension_semantics<parallel>], iteration_bounds = array<i64: 1>, scalar_prefetch = 0 : i64, scratch_operands = 0 : i64, tpu.core_type = #tpu.core_type<tc>, window_params = [{transform_indices = @transform_0, window_bounds = array<i64: 8, 36>}, {pipeline_mode = #tpu.pipeline_mode<synchronous>, transform_indices = @transform_1, window_bounds = array<i64: 36, 32>}, {pipeline_mode = #tpu.pipeline_mode<synchronous>, transform_indices = @transform_2, window_bounds = array<i64: 128, 32>}, {pipeline_mode = #tpu.pipeline_mode<synchronous>, transform_indices = @transform_3, window_bounds = array<i64: 256, 32>}, {pipeline_mode = #tpu.pipeline_mode<synchronous>, transform_indices = @transform_4, window_bounds = array<i64: 1, 32>}, {pipeline_mode = #tpu.pipeline_mode<synchronous>, transform_indices = @transform_5, window_bounds = array<i64: 32, 16>}, {pipeline_mode = #tpu.pipeline_mode<synchronous>, transform_indices = @transform_6, window_bounds = array<i64: 1, 16>}, {pipeline_mode = #tpu.pipeline_mode<synchronous>, transform_indices = @transform_7, window_bounds = array<i64: 16, 8>}, {pipeline_mode = #tpu.pipeline_mode<synchronous>, transform_indices = @transform_8, window_bounds = array<i64: 1, 8>}, {transform_indices = @transform_9, window_bounds = array<i64: 8, 8>}]} {
    %c0 = arith.constant 0 : index
    %c0_0 = arith.constant 0 : index
    %0 = vector.load %arg1[%c0, %c0_0] : memref<8x36xf32, #tpu.memory_space<vmem>>, vector<8x36xf32>
    %c0_1 = arith.constant 0 : index
    %c0_2 = arith.constant 0 : index
    %1 = vector.load %arg2[%c0_1, %c0_2] : memref<36x32xf32, #tpu.memory_space<vmem>>, vector<36x32xf32>
    %cst = arith.constant dense<0.000000e+00> : vector<8x32xf32>
    %2 = tpu.matmul %0, %1, %cst {dimension_numbers = #tpu.dot_dimension_numbers<[1], [0], [0], [1], [0, 0, 1, 1], [], []>} : vector<8x36xf32>, vector<36x32xf32>, vector<8x32xf32> -> vector<8x32xf32>
    %3 = vector.extract_strided_slice %0 {offsets = [0, 16], sizes = [8, 1], strides = [1, 1]} : vector<8x36xf32> to vector<8x1xf32>
    %4 = arith.fptosi %3 : vector<8x1xf32> to vector<8x1xi32>
    %5 = vector.extract_strided_slice %0 {offsets = [0, 17], sizes = [8, 1], strides = [1, 1]} : vector<8x36xf32> to vector<8x1xf32>
    %6 = arith.fptosi %5 : vector<8x1xf32> to vector<8x1xi32>
    %7 = tpu.iota {dimensions = array<i32: 1>} : vector<8x128xi32>
    %8 = vector.broadcast %4 : vector<8x1xi32> to vector<8x128xi32>
    %9 = arith.cmpi eq, %8, %7 : vector<8x128xi32>
    %10 = arith.extui %9 : vector<8x128xi1> to vector<8x128xi32>
    %11 = arith.sitofp %10 : vector<8x128xi32> to vector<8x128xf32>
    %12 = tpu.iota {dimensions = array<i32: 1>} : vector<8x256xi32>
    %13 = vector.broadcast %6 : vector<8x1xi32> to vector<8x256xi32>
    %14 = arith.cmpi eq, %13, %12 : vector<8x256xi32>
    %15 = arith.extui %14 : vector<8x256xi1> to vector<8x256xi32>
    %16 = arith.sitofp %15 : vector<8x256xi32> to vector<8x256xf32>
    %c0_3 = arith.constant 0 : index
    %c0_4 = arith.constant 0 : index
    %17 = vector.load %arg3[%c0_3, %c0_4] : memref<128x32xf32, #tpu.memory_space<vmem>>, vector<128x32xf32>
    %cst_5 = arith.constant dense<0.000000e+00> : vector<8x32xf32>
    %18 = tpu.matmul %11, %17, %cst_5 {dimension_numbers = #tpu.dot_dimension_numbers<[1], [0], [0], [1], [0, 0, 1, 1], [], []>} : vector<8x128xf32>, vector<128x32xf32>, vector<8x32xf32> -> vector<8x32xf32>
    %19 = arith.addf %2, %18 : vector<8x32xf32>
    %c0_6 = arith.constant 0 : index
    %c0_7 = arith.constant 0 : index
    %20 = vector.load %arg4[%c0_6, %c0_7] : memref<256x32xf32, #tpu.memory_space<vmem>>, vector<256x32xf32>
    %cst_8 = arith.constant dense<0.000000e+00> : vector<8x32xf32>
    %21 = tpu.matmul %16, %20, %cst_8 {dimension_numbers = #tpu.dot_dimension_numbers<[1], [0], [0], [1], [0, 0, 1, 1], [], []>} : vector<8x256xf32>, vector<256x32xf32>, vector<8x32xf32> -> vector<8x32xf32>
    %22 = arith.addf %19, %21 : vector<8x32xf32>
    %c0_9 = arith.constant 0 : index
    %c0_10 = arith.constant 0 : index
    %23 = vector.load %arg5[%c0_9, %c0_10] : memref<1x32xf32, #tpu.memory_space<vmem>>, vector<1x32xf32>
    %24 = vector.broadcast %23 : vector<1x32xf32> to vector<8x32xf32>
    %25 = arith.addf %22, %24 : vector<8x32xf32>
    %cst_11 = arith.constant 0.000000e+00 : f32
    %26 = vector.broadcast %cst_11 : f32 to vector<8x32xf32>
    %27 = arith.maximumf %25, %26 : vector<8x32xf32>
    %c0_12 = arith.constant 0 : index
    %c0_13 = arith.constant 0 : index
    %28 = vector.load %arg6[%c0_12, %c0_13] : memref<32x16xf32, #tpu.memory_space<vmem>>, vector<32x16xf32>
    %cst_14 = arith.constant dense<0.000000e+00> : vector<8x16xf32>
    %29 = tpu.matmul %27, %28, %cst_14 {dimension_numbers = #tpu.dot_dimension_numbers<[1], [0], [0], [1], [0, 0, 1, 1], [], []>} : vector<8x32xf32>, vector<32x16xf32>, vector<8x16xf32> -> vector<8x16xf32>
    %c0_15 = arith.constant 0 : index
    %c0_16 = arith.constant 0 : index
    %30 = vector.load %arg7[%c0_15, %c0_16] : memref<1x16xf32, #tpu.memory_space<vmem>>, vector<1x16xf32>
    %31 = vector.broadcast %30 : vector<1x16xf32> to vector<8x16xf32>
    %32 = arith.addf %29, %31 : vector<8x16xf32>
    %cst_17 = arith.constant 0.000000e+00 : f32
    %33 = vector.broadcast %cst_17 : f32 to vector<8x16xf32>
    %34 = arith.maximumf %32, %33 : vector<8x16xf32>
    %c0_18 = arith.constant 0 : index
    %c0_19 = arith.constant 0 : index
    %35 = vector.load %arg8[%c0_18, %c0_19] : memref<16x8xf32, #tpu.memory_space<vmem>>, vector<16x8xf32>
    %cst_20 = arith.constant dense<0.000000e+00> : vector<8x8xf32>
    %36 = tpu.matmul %34, %35, %cst_20 {dimension_numbers = #tpu.dot_dimension_numbers<[1], [0], [0], [1], [0, 0, 1, 1], [], []>} : vector<8x16xf32>, vector<16x8xf32>, vector<8x8xf32> -> vector<8x8xf32>
    %c0_21 = arith.constant 0 : index
    %c0_22 = arith.constant 0 : index
    %37 = vector.load %arg9[%c0_21, %c0_22] : memref<1x8xf32, #tpu.memory_space<vmem>>, vector<1x8xf32>
    %38 = vector.broadcast %37 : vector<1x8xf32> to vector<8x8xf32>
    %39 = arith.addf %36, %38 : vector<8x8xf32>
    %cst_23 = arith.constant 0.000000e+00 : f32
    %cst_24 = arith.constant 5.000000e+00 : f32
    %40 = vector.broadcast %cst_23 : f32 to vector<8x8xf32>
    %41 = arith.maximumf %40, %39 : vector<8x8xf32>
    %42 = vector.broadcast %cst_24 : f32 to vector<8x8xf32>
    %43 = arith.minimumf %42, %41 : vector<8x8xf32>
    %c0_25 = arith.constant 0 : index
    %c0_26 = arith.constant 0 : index
    %44 = vector.load %arg10[%c0_25, %c0_26] : memref<8x8xf32, #tpu.memory_space<vmem>>, vector<8x8xf32>
    tpu.vector_store %arg10[%c0_25, %c0_26], %43 {strides = array<i32>} : memref<8x8xf32, #tpu.memory_space<vmem>>, vector<8x8xf32>,
    return
  }
  func.func @transform_0(%arg0: i32) -> (i32, i32) {
    %c0_i32 = arith.constant 0 : i32
    %c0_i32_0 = arith.constant 0 : i32
    return %arg0, %c0_i32 : i32, i32
  }
  func.func @transform_1(%arg0: i32) -> (i32, i32) {
    %c0_i32 = arith.constant 0 : i32
    %c0_i32_0 = arith.constant 0 : i32
    %c0_i32_1 = arith.constant 0 : i32
    return %c0_i32, %c0_i32_0 : i32, i32
  }
  func.func @transform_2(%arg0: i32) -> (i32, i32) {
    %c0_i32 = arith.constant 0 : i32
    %c0_i32_0 = arith.constant 0 : i32
    %c0_i32_1 = arith.constant 0 : i32
    return %c0_i32, %c0_i32_0 : i32, i32
  }
  func.func @transform_3(%arg0: i32) -> (i32, i32) {
    %c0_i32 = arith.constant 0 : i32
    %c0_i32_0 = arith.constant 0 : i32
    %c0_i32_1 = arith.constant 0 : i32
    return %c0_i32, %c0_i32_0 : i32, i32
  }
  func.func @transform_4(%arg0: i32) -> (i32, i32) {
    %c0_i32 = arith.constant 0 : i32
    %c0_i32_0 = arith.constant 0 : i32
    %c0_i32_1 = arith.constant 0 : i32
    return %c0_i32, %c0_i32_0 : i32, i32
  }
  func.func @transform_5(%arg0: i32) -> (i32, i32) {
    %c0_i32 = arith.constant 0 : i32
    %c0_i32_0 = arith.constant 0 : i32
    %c0_i32_1 = arith.constant 0 : i32
    return %c0_i32, %c0_i32_0 : i32, i32
  }
  func.func @transform_6(%arg0: i32) -> (i32, i32) {
    %c0_i32 = arith.constant 0 : i32
    %c0_i32_0 = arith.constant 0 : i32
    %c0_i32_1 = arith.constant 0 : i32
    return %c0_i32, %c0_i32_0 : i32, i32
  }
  func.func @transform_7(%arg0: i32) -> (i32, i32) {
    %c0_i32 = arith.constant 0 : i32
    %c0_i32_0 = arith.constant 0 : i32
    %c0_i32_1 = arith.constant 0 : i32
    return %c0_i32, %c0_i32_0 : i32, i32
  }
  func.func @transform_8(%arg0: i32) -> (i32, i32) {
    %c0_i32 = arith.constant 0 : i32
    %c0_i32_0 = arith.constant 0 : i32
    %c0_i32_1 = arith.constant 0 : i32
    return %c0_i32, %c0_i32_0 : i32, i32
  }
  func.func @transform_9(%arg0: i32) -> (i32, i32) {
    %c0_i32 = arith.constant 0 : i32
    %c0_i32_0 = arith.constant 0 : i32
    return %arg0, %c0_i32 : i32, i32
  }
}

</mosaic_0001>

<bundles_post_ra>
// kernel: ncf_forward.1
= control target key start
LH: loop header
LB: loop body
LE: loop exit
PB: predicated region body
PF: predicated region fallthrough
CT: control target
= control target key end

     0   :  { %v737_v0 = vmov 17   ;;  %v738_v2 = vmov 0.0|0.0   ;;  %vm739_vm0 = vmmov 0   ;;  %v740_v9 = vmov 0.0   ;;  %s1009_s0 = inlined_call_operand.vmem [shape: f32[8,36], index: 0, kind: input, shape index: {}]   ;;  %s1010_s1 = inlined_call_operand.vmem [shape: f32[36,32], index: 1, kind: input, shape index: {}]   ;;  %s1011_s2 = inlined_call_operand.vmem [shape: f32[128,32], index: 2, kind: input, shape index: {}]   ;;  %s1012_s3 = inlined_call_operand.vmem [shape: f32[256,32], index: 3, kind: input, shape index: {}]   ;;  %s1013_s5 = inlined_call_operand.vmem [shape: f32[32,16], index: 5, kind: input, shape index: {}]   ;;  %s1014_s4 = inlined_call_operand.vmem [shape: f32[1,32], index: 4, kind: input, shape index: {}]   ;;  %s1015_s7 = inlined_call_operand.vmem [shape: f32[16,8], index: 7, kind: input, shape index: {}]   ;;  %s1016_s6 = inlined_call_operand.vmem [shape: f32[1,16], index: 6, kind: input, shape index: {}]   ;;  %s1017_s8 = inlined_call_operand.vmem [shape: f32[1,8], index: 8, kind: input, shape index: {}]   ;;  %s1018_s9 = inlined_call_operand.vmem [shape: f32[8,8], index: 9, kind: output, shape index: {}]  }
   0x1   :  { %734 = vset.pattern.permute.xlu0 %v737_v0  ;;  %v32_v1 = vld [vmem:[%s1009_s0] sm:$0xff]  ;;  %679 = vmatprep.subr.bf16.mxu1 %v738_v2  ;;  %v34_v4 = vld [vmem:[%s1010_s1 + $0x8] sm:$0xff]  ;;  %v35_v7 = vld [vmem:[%s1010_s1 + $0x10] sm:$0xff]  ;;  %vm147_vm1 = vcmask 1043456   ;;  %v741_v28 = vmov 16   ;;  %vm143_vm2 = vcmask 293888  }
   0x2   :  { %v33_v3 = vld [vmem:[%s1010_s1] sm:$0xff]  ;;  %v726_v5 = vtrunc.f32 %v32_v1  ;;  %v36_v8 = vld [vmem:[%s1010_s1 + $0x18] sm:$0xff]  ;;  %634 = vmatprep.mubr.msk.f32.mxu1 %vm739_vm0, %v740_v9  ;;  %655 = vmatprep.subr.bf16.mxu0 %v738_v2  ;;  %v58_v13 = vld [vmem:[%s1011_s2 + $0x8] sm:$0xff]  ;;  %vm344_vm6 = vcmask 261120   ;;  %vm428_vm7 = vcmask 130048   ;;  %vm504_vm8 = vcmask 64512  }
   0x3   :  { %v680_v6 = vpack.c.bf16 %v34_v4, %v33_v3  ;;  %621 = vmatprep.mubr.msk.f32.mxu0 %vm739_vm0, %v740_v9  ;;  %v683_v11 = vpack.c.bf16 %v36_v8, %v35_v7  ;;  %v57_v12 = vld [vmem:[%s1011_s2] sm:$0xff]  ;;  %v238_v15 = vld [vmem:[%s1012_s3 + $0x88] sm:$0xff]  ;;  %v59_v19 = vld [vmem:[%s1011_s2 + $0x10] sm:$0xff] }
   0x4   :  { %v727_v10 = vcvt.f32.s32 %v726_v5  ;;  %v237_v14 = vld [vmem:[%s1012_s3 + $0x80] sm:$0xff]  ;;  %v656_v17 = vpack.c.bf16 %v58_v13, %v57_v12  ;;  %v222_v18 = vld [vmem:[%s1012_s3 + $0x8] sm:$0xff]  ;;  %v60_v20 = vld [vmem:[%s1011_s2 + $0x18] sm:$0xff] }
   0x5   :  { %681 = vmatpush3.bf16.msra.mxu1 %v680_v6  ;;  %v221_v16 = vld [vmem:[%s1012_s3] sm:$0xff]  ;;  %v239_v21 = vld [vmem:[%s1012_s3 + $0x90] sm:$0xff]  ;;  %v240_v22 = vld [vmem:[%s1012_s3 + $0x98] sm:$0xff]  ;;  %v659_v23 = vpack.c.bf16 %v60_v20, %v59_v19  ;;  %v685_v25 = vpack.c.bf16 %v238_v15, %v237_v14 }
   0x6   :  { %682 = vmatprep.subr.bf16.mxu1 %v738_v2  ;;  %49 = vperm.xlu0 %734, %v727_v10   ;;  %v37_v24 = vld [vmem:[%s1010_s1 + $0x20] sm:$0xf]  ;;  %v62_v27 = vld [vmem:[%s1011_s2 + $0x28] sm:$0xff]  ;;  %v687_v29 = vpack.c.bf16 %v222_v18, %v221_v16  ;;  %v689_v30 = vpack.c.bf16 %v240_v22, %v239_v21  ;;  %v223_v31 = vld [vmem:[%s1012_s3 + $0x10] sm:$0xff] }
   0x7   :  { %657 = vmatpush3.bf16.msra.mxu0 %v656_v17  ;;  %v61_v26 = vld [vmem:[%s1011_s2 + $0x20] sm:$0xff]  ;;  %v224_v32 = vld [vmem:[%s1012_s3 + $0x18] sm:$0xff]  ;;  %v242_v34 = vld [vmem:[%s1012_s3 + $0xa8] sm:$0xff] }
   0x8   :  { %658 = vmatprep.subr.bf16.mxu0 %v738_v2  ;;  %v241_v33 = vld [vmem:[%s1012_s3 + $0xa0] sm:$0xff]  ;;  %v662_v35 = vpack.c.bf16 %v62_v27, %v61_v26  ;;  %v63_v36 = vld [vmem:[%s1011_s2 + $0x30] sm:$0xff]  ;;  %v64_v37 = vld [vmem:[%s1011_s2 + $0x38] sm:$0xff]  ;;  %v691_v38 = vpack.c.bf16 %v224_v32, %v223_v31 }
   0x9   :  { %684 = vmatpush3.bf16.msra.mxu1 %v683_v11  ;;  %v693_v39 = vpack.c.bf16 %v242_v34, %v241_v33  ;;  %v225_v40 = vld [vmem:[%s1012_s3 + $0x20] sm:$0xff]  ;;  %v226_v41 = vld [vmem:[%s1012_s3 + $0x28] sm:$0xff]  ;;  %v243_v42 = vld [vmem:[%s1012_s3 + $0xb0] sm:$0xff]  ;;  %v665_v44 = vpack.c.bf16 %v64_v37, %v63_v36 }
   0xa   :  { %632 = vmatprep.subr.mxu1 %v740_v9  ;;  %735 = vset.pattern.permute.xlu0 %v741_v28  ;;  %v244_v43 = vld [vmem:[%s1012_s3 + $0xb8] sm:$0xff]  ;;  %v65_v45 = vld [vmem:[%s1011_s2 + $0x40] sm:$0xff]  ;;  %v66_v46 = vld [vmem:[%s1011_s2 + $0x48] sm:$0xff]  ;;  %v695_v47 = vpack.c.bf16 %v226_v41, %v225_v40  ;;  %v742_v28 = vmov 1.0  }
   0xb   :  { %42 = vperm.xlu0 %735, %v727_v10   ;;  %660 = vmatpush3.bf16.msra.mxu0 %v659_v23  ;;  %v697_v48 = vpack.c.bf16 %v244_v43, %v243_v42  ;;  %v227_v49 = vld [vmem:[%s1012_s3 + $0x30] sm:$0xff]  ;;  %v228_v50 = vld [vmem:[%s1012_s3 + $0x38] sm:$0xff]  ;;  %v245_v51 = vld [vmem:[%s1012_s3 + $0xc0] sm:$0xff]  ;;  %v668_v53 = vpack.c.bf16 %v66_v46, %v65_v45 }
   0xc   :  { %661 = vmatprep.subr.bf16.mxu0 %v738_v2  ;;  %v246_v52 = vld [vmem:[%s1012_s3 + $0xc8] sm:$0xff]  ;;  %v67_v54 = vld [vmem:[%s1011_s2 + $0x50] sm:$0xff]  ;;  %v68_v55 = vld [vmem:[%s1011_s2 + $0x58] sm:$0xff]  ;;  %v699_v56 = vpack.c.bf16 %v228_v50, %v227_v49 }
   0xd   :  { %633 = vmatpush3.msk.msra.mxu1 %vm147_vm1, %v37_v24  ;;  %v701_v57 = vpack.c.bf16 %v246_v52, %v245_v51  ;;  %v229_v58 = vld [vmem:[%s1012_s3 + $0x40] sm:$0xff]  ;;  %v230_v59 = vld [vmem:[%s1012_s3 + $0x48] sm:$0xff]  ;;  %v247_v60 = vld [vmem:[%s1012_s3 + $0xd0] sm:$0xff]  ;;  %v671_v62 = vpack.c.bf16 %v68_v55, %v67_v54  ;;  %v39_v24 = vlaneseq }
   0xe   :  { %686 = vmatprep.subr.bf16.mxu1 %v685_v25  ;;  %635 = vmatmul.mubr.msk.f32.vlgmr.msra.gmra.mrb[0].mxu1 %vm143_vm2, %v32_v1  ;;  %v248_v61 = vld [vmem:[%s1012_s3 + $0xd8] sm:$0xff]  ;;  %v69_v63 = vld [vmem:[%s1011_s2 + $0x60] sm:$0xff]  ;;  %v703_v1 = vpack.c.bf16 %v230_v59, %v229_v58  ;;  %v231_v4 = vld [vmem:[%s1012_s3 + $0x50] sm:$0xff] }
   0xf   :  { %688 = vmatpush3.bf16.msra.mxu1 %v687_v29  ;;  %736 = vset.pattern.permute.xlu0 %v737_v0  ;;  %v70_v0 = vld [vmem:[%s1011_s2 + $0x68] sm:$0xff]  ;;  %v705_v3 = vpack.c.bf16 %v248_v61, %v247_v60  ;;  %v232_v5 = vld [vmem:[%s1012_s3 + $0x58] sm:$0xff]  ;;  %v249_v6 = vld [vmem:[%s1012_s3 + $0xe0] sm:$0xff]  ;;  %v40_v25 = vand.u32 127, %v39_v24 }
  0x10   :  { %690 = vmatprep.subr.bf16.mxu1 %v689_v30  ;;  %663 = vmatpush3.bf16.msra.mxu0 %v662_v35  ;;  %v250_v7 = vld [vmem:[%s1012_s3 + $0xe8] sm:$0xff]  ;;  %v674_v8 = vpack.c.bf16 %v70_v0, %v69_v63  ;;  %v71_v10 = vld [vmem:[%s1011_s2 + $0x70] sm:$0xff]  ;;  %v72_v11 = vld [vmem:[%s1011_s2 + $0x78] sm:$0xff]  ;;  %v707_v12 = vpack.c.bf16 %v232_v5, %v231_v4 }
  0x11   :  { %664 = vmatprep.subr.bf16.mxu0 %v738_v2  ;;  %v709_v13 = vpack.c.bf16 %v250_v7, %v249_v6  ;;  %v233_v14 = vld [vmem:[%s1012_s3 + $0x60] sm:$0xff]  ;;  %v234_v15 = vld [vmem:[%s1012_s3 + $0x68] sm:$0xff]  ;;  %v251_v16 = vld [vmem:[%s1012_s3 + $0xf0] sm:$0xff]  ;;  %v677_v18 = vpack.c.bf16 %v72_v11, %v71_v10  ;;  %v47_v26 = vadd.s32 128, %v40_v25 }
  0x12   :  { %v252_v17 = vld [vmem:[%s1012_s3 + $0xf8] sm:$0xff]  ;;  %v711_v19 = vpack.c.bf16 %v234_v15, %v233_v14  ;;  %v235_v21 = vld [vmem:[%s1012_s3 + $0x70] sm:$0xff]  ;;  %v333_v30 = vld [vmem:[%s1013_s5] sm:$0xff] }
  0x13   :  { %692 = vmatpush3.bf16.msra.mxu1 %v691_v38  ;;  %v713_v20 = vpack.c.bf16 %v252_v17, %v251_v16  ;;  %v236_v22 = vld [vmem:[%s1012_s3 + $0x78] sm:$0xff]  ;;  %v334_v31 = vld [vmem:[%s1013_s5 + $0x8] sm:$0xff]  ;;  %v335_v35 = vld [vmem:[%s1013_s5 + $0x10] sm:$0xff] }
  0x14   :  { %694 = vmatprep.subr.bf16.mxu1 %v693_v39  ;;  %666 = vmatpush3.bf16.msra.mxu0 %v665_v44  ;;  %v715_v23 = vpack.c.bf16 %v236_v22, %v235_v21  ;;  %v718_v32 = vpack.c.bf16 %v334_v31, %v333_v30  ;;  %v336_v36 = vld [vmem:[%s1013_s5 + $0x18] sm:$0xff]  ;;  %v518_v44 = vld [vmem:[%s1014_s4] ss:$0 sm:$0xff] }
  0x15   :  { %667 = vmatprep.subr.bf16.mxu0 %v738_v2  ;;  %v721_v37 = vpack.c.bf16 %v336_v36, %v335_v35  ;;  %v519_v50 = vld [vmem:[%s1016_s6] ss:$0 sm:$0xff] }
  0x17   :  { %696 = vmatpush3.bf16.msra.mxu1 %v695_v47 }
  0x18   :  { %698 = vmatprep.subr.bf16.mxu1 %v697_v48  ;;  %669 = vmatpush3.bf16.msra.mxu0 %v668_v53  ;;  %v420_v48 = vld [vmem:[%s1015_s7 + $0x8] sm:$0xff] }
  0x19   :  { %670 = vmatprep.subr.bf16.mxu0 %v738_v2 }
  0x1b   :  { %700 = vmatpush3.bf16.msra.mxu1 %v699_v56 }
  0x1c   :  { %702 = vmatprep.subr.bf16.mxu1 %v701_v57  ;;  %672 = vmatpush3.bf16.msra.mxu0 %v671_v62 }
  0x1d   :  { %673 = vmatprep.subr.bf16.mxu0 %v738_v2 }
  0x1f   :  { %704 = vmatpush3.bf16.msra.mxu1 %v703_v1 }
  0x20   :  { %706 = vmatprep.subr.bf16.mxu1 %v705_v3  ;;  %675 = vmatpush3.bf16.msra.mxu0 %v674_v8 }
  0x21   :  { %676 = vmatprep.subr.bf16.mxu0 %v738_v2 }
  0x23   :  { %708 = vmatpush3.bf16.msra.mxu1 %v707_v12 }
  0x24   :  { %710 = vmatprep.subr.bf16.mxu1 %v709_v13  ;;  %678 = vmatpush3.bf16.msra.mxu0 %v677_v18 }
  0x25   :  { %717 = vmatprep.subr.bf16.mxu0 %v738_v2 }
  0x27   :  { %712 = vmatpush3.bf16.msra.mxu1 %v711_v19 }
  0x28   :  { %714 = vmatprep.subr.bf16.mxu1 %v713_v20 }
  0x2b   :  { %716 = vmatpush3.bf16.msra.mxu1 %v715_v23 }
  0x85   :  { %v50_v27 = vpop.permute.xlu0 %49 }
  0x86   :  { %vm51_vm3 = vcmp.eq.s32.totalorder %v50_v27, %v40_v25  ;;  %vm52_vm4 = vcmp.eq.s32.totalorder %v50_v27, %v47_v26 }
  0x87   :  { %516 = vmatprep.mubr.msk.f32.mxu1 %vm52_vm4, %v742_v28 }
  0x88   :  { %517 = vmatmul.mubr.msk.f32.vlgmr.msra.gmra.mrb[2].mxu1 %vm51_vm3, %v742_v28 }
  0x8a   :  { %v43_v29 = vpop.permute.xlu0 %42 }
  0x8b   :  { %vm44_vm5 = vcmp.eq.s32.totalorder %v43_v29, %v40_v25 }
  0x8c   :  { %622 = vmatmul.mubr.msk.f32.vlgmr.msra.gmra.mrb[0].mxu0 %vm44_vm5, %v742_v28 }
  0x8d   :  { %645 = vmatprep.mubr.msk.f32.mxu0 %vm739_vm0, %v740_v9  ;;  %719 = vmatpush3.bf16.msra.mxu0 %v718_v32 }
  0x8e   :  { %720 = vmatprep.subr.bf16.mxu0 %v738_v2 }
  0x91   :  { %722 = vmatpush3.bf16.msra.mxu0 %v721_v37 }
  0x92   :  { %723 = vmatprep.subr.bf16.mxu0 %v738_v2  ;;  %v419_v2 = vld [vmem:[%s1015_s7] sm:$0xff] }
  0x93   :  { %v724_v49 = vpack.c.bf16 %v420_v48, %v419_v2 }
  0xe1   :  { %v217_v33 = vpop.f32.mrb[0].mxu1 }
  0xe2   :  { %v636_v34 = vpop.f32.mrb[1].mxu1 }
 0x15b   :  { %v578_v38 = vpop.f32.mrb[2].mxu1 }
 0x15c   :  { %v579_v39 = vpop.f32.mrb[3].mxu1 }
 0x15d   :  { %v580_v40 = vadd.f32 %v579_v39, %v578_v38 }
 0x15f   :  { %v139_v41 = vpop.f32.mrb[0].mxu0 }
 0x160   :  { %v218_v42 = vadd.f32 %v217_v33, %v139_v41  ;;  %v623_v43 = vpop.f32.mrb[1].mxu0 }
 0x162   :  { %v323_v45 = vadd.f32 %v580_v40, %v218_v42 }
 0x164   :  { %v331_v46 = vadd.f32 %v518_v44, %v323_v45 }
 0x166   :  { %v332_v47 = vmax.f32 %v331_v46, 0.0 }
 0x168   :  { %646 = vmatmul.mubr.msk.f32.vlgmr.msra.gmra.mrb[2].mxu0 %vm344_vm6, %v332_v47 }
 0x169   :  { %652 = vmatprep.mubr.msk.f32.mxu0 %vm739_vm0, %v740_v9  ;;  %725 = vmatpush3.bf16.msra.mxu0 %v724_v49  ;;  %v521_v9 = vld [vmem:[%s1017_s8] ss:$0 sm:$0xff] }
 0x23b   :  { %v414_v51 = vpop.f32.mrb[2].mxu0 }
 0x23c   :  { %v415_v52 = vadd.f32 %v519_v50, %v414_v51  ;;  %v647_v53 = vpop.f32.mrb[3].mxu0 }
 0x23e   :  { %v418_v54 = vmax.f32 %v415_v52, 0.0 }
 0x240   :  { %653 = vmatmul.mubr.msk.f32.vlgmr.msra.gmra.mrb[4].mxu0 %vm428_vm7, %v418_v54 }
 0x313   :  { %v498_v55 = vpop.f32.mrb[4].mxu0 }
 0x314   :  { %v499_v56 = vadd.f32 %v521_v9, %v498_v55  ;;  %v654_v57 = vpop.f32.mrb[5].mxu0 }
 0x316   :  { %v502_v58 = vmax.f32 %v499_v56, 0.0 }
 0x318   :  { %v503_v59 = vmin.f32 %v502_v58, 5.0 }
 0x31a   :  { %505 = vst.msk [vmem:[%s1018_s9] sm:$0xff] %vm504_vm8, %v503_v59 }

</bundles_post_ra>
